<compile_context>
chip_gen: v6e
topology: v6e:2x2x1
jax: 0.10.0
libtpu: 0.0.40
codegen_flags: <defaults>
</compile_context>

<pallas_src>
import functools

import jax
import jax.numpy as jnp
import numpy as np
from jax.experimental import pallas as pl
from jax.experimental.pallas import tpu as pltpu


def _mpn_readout_kernel(x_ref, ah_ref, mask_ref, rmask_ref,
                        w_mps_ref, w_r_ref, b_r_ref, out_ref,
                        *, n_steps, bblk):
    n = x_ref.shape[1]
    h_dim = x_ref.shape[2]

    x = x_ref[...]              # (bblk, N, H) f32 residual accumulator
    a_hat = ah_ref[...]         # (bblk, N, N) bf16, A + I (precomputed in wrapper)
    mask = mask_ref[...]        # (bblk, N, 1) f32

    for s in range(n_steps):    # n_steps is static -> unrolled
        w = w_mps_ref[s]        # (H, H) bf16 node_proj weight (pre-transposed)
        # node_proj for the whole batch block as a single (bblk*N, H) @ (H, H) MXU matmul.
        h = jnp.dot(x.reshape(bblk * n, h_dim).astype(jnp.bfloat16), w,
                    preferred_element_type=jnp.float32).reshape(bblk, n, h_dim)
        # message passing: batched A_hat @ h, masked, residual update (f32 accumulation).
        msg = jnp.einsum("bnm,bmh->bnh", a_hat, h.astype(jnp.bfloat16),
                         preferred_element_type=jnp.float32)
        x = x + msg * mask

    # readout: Linear + LeakyReLU, then masked mean == sum(node * mask / sum(mask)).
    node = jnp.dot(x.reshape(bblk * n, h_dim).astype(jnp.bfloat16), w_r_ref[...],
                   preferred_element_type=jnp.float32) + b_r_ref[...]
    node = jnp.where(node >= 0, node, 0.01 * node)          # LeakyReLU(0.01)
    node = node.reshape(bblk, n, h_dim)
    g = jnp.sum(node * rmask_ref[...], axis=1)              # (bblk, H)
    out_ref[...] = g.reshape(bblk, 1, h_dim).astype(out_ref.dtype)


def _pick_bblk(total_b):
    # Largest batch block (<= 8) that still leaves >= 2 grid iterations so both v7x
    # TensorCores (and megacore on v5e/v6e) get work.
    for cand in (8, 4, 2):
        if total_b % cand == 0 and total_b // cand >= 2:
            return cand
    return 1


def coattn_mpn_forward(x1, a1, m1, x2, a2, m2, params):
    """Fused forward for both graphs (update_method='res'). Returns (g1, g2) of shape (B, H)."""
    B, N1, H = x1.shape
    _, N2, _ = x2.shape
    N = max(N1, N2)

    def pad(x, a, m):
        n = x.shape[1]
        return (jnp.pad(x, ((0, 0), (0, N - n), (0, 0))),
                jnp.pad(a, ((0, 0), (0, N - n), (0, N - n))),
                jnp.pad(m, ((0, 0), (0, N - n))))

    x1p, a1p, m1p = pad(x1, a1, m1)
    x2p, a2p, m2p = pad(x2, a2, m2)

    x = jnp.concatenate([x1p, x2p], 0).astype(jnp.float32)     # (2B, N, H)
    a = jnp.concatenate([a1p, a2p], 0).astype(jnp.float32)     # (2B, N, N)
    m = jnp.concatenate([m1p, m2p], 0).astype(jnp.float32)     # (2B, N)

    # Hoisted out of the kernel: A_hat = A + I (0/1/2 -> exact in bf16) and the masked-mean
    # weights mask / sum(mask) (padded nodes have mask 0, so padding does not change results).
    a_hat = (a + jnp.eye(N, dtype=a.dtype)[None]).astype(jnp.bfloat16)
    mask3 = m[..., None]                                       # (2B, N, 1)
    rmask3 = mask3 / jnp.sum(mask3, axis=1, keepdims=True)     # (2B, N, 1)

    w_mps = params["w_mps"].astype(jnp.bfloat16)               # (S, H, H)
    w_r = params["w_r"].astype(jnp.bfloat16)                   # (H, H)
    b_r = params["b_r"].reshape(1, H).astype(jnp.float32)      # (1, H)
    S = w_mps.shape[0]

    TB = 2 * B
    bblk = _pick_bblk(TB)
    kernel = functools.partial(_mpn_readout_kernel, n_steps=S, bblk=bblk)

    # TODO(synk): for large N, tile the (bblk, N, N) adjacency block over a reduction grid
    # axis (or raise vmem_limit_bytes) so the kernel stays within v7x's 64 MiB VMEM.
    out = pl.pallas_call(
        kernel,
        out_shape=jax.ShapeDtypeStruct((TB, 1, H), jnp.float32),
        grid_spec=pltpu.PrefetchScalarGridSpec(
            num_scalar_prefetch=0,
            grid=(TB // bblk,),
            in_specs=[
                pl.BlockSpec((bblk, N, H), lambda b: (b, 0, 0)),   # x
                pl.BlockSpec((bblk, N, N), lambda b: (b, 0, 0)),   # A_hat = A + I (bf16)
                pl.BlockSpec((bblk, N, 1), lambda b: (b, 0, 0)),   # mask
                pl.BlockSpec((bblk, N, 1), lambda b: (b, 0, 0)),   # mask / sum(mask)
                pl.BlockSpec((S, H, H), lambda b: (0, 0, 0)),      # node_proj weights (all steps)
                pl.BlockSpec((H, H), lambda b: (0, 0)),            # pre_readout weight
                pl.BlockSpec((1, H), lambda b: (0, 0)),            # pre_readout bias
            ],
            out_specs=pl.BlockSpec((bblk, 1, H), lambda b: (b, 0, 0)),
        ),
        compiler_params=pltpu.CompilerParams(
            dimension_semantics=("parallel",)),
    )(x, a_hat, mask3, rmask3, w_mps, w_r, b_r)

    g = out.reshape(TB, H)
    return g[:B], g[B:]


def _reference_forward(x, a, mask, w_mps, w_r, b_r, *, bf16_matmul):
    # Pure-JAX mirror of the PyTorch forward (update_method='res').
    # bf16_matmul=True mirrors the kernel's precision policy (bf16 MXU operands, f32 accum).
    N = x.shape[1]
    cast = (lambda t: t.astype(jnp.bfloat16)) if bf16_matmul else (lambda t: t)
    a_hat = a + jnp.eye(N, dtype=a.dtype)[None]
    m3 = mask[..., None]
    for s in range(w_mps.shape[0]):
        h = jnp.einsum("bnh,hk->bnk", cast(x), cast(w_mps[s]),
                       preferred_element_type=jnp.float32)
        msg = jnp.einsum("bnm,bmh->bnh", cast(a_hat), cast(h),
                         preferred_element_type=jnp.float32)
        x = x + msg * m3
    node = jnp.einsum("bnh,hk->bnk", cast(x), cast(w_r),
                      preferred_element_type=jnp.float32) + b_r
    node = jnp.where(node >= 0, node, 0.01 * node) * m3
    return jnp.mean(node, axis=1) / jnp.mean(m3, axis=1)


if __name__ == "__main__":
    # hidden_dim chosen as 128 (free hyperparameter of the module) so every op is lane-dense.
    B, N1, N2, H, N_STEP = 2, 8, 16, 128, 3
    key = jax.random.PRNGKey(0)
    keys = jax.random.split(key, 10)

    # Deterministic "xavier-normal-ish" parameter init (shapes from __init__).
    std = np.sqrt(2.0 / (H + H))
    w_mps = jax.random.normal(keys[0], (N_STEP, H, H), jnp.float32) * std  # node_proj (pre-transposed)
    w_r = jax.random.normal(keys[1], (H, H), jnp.float32) * std            # pre_readout_proj weight
    b_r = jax.random.normal(keys[2], (H,), jnp.float32) * 0.1              # pre_readout_proj bias
    params = {"w_mps": w_mps, "w_r": w_r, "b_r": b_r}
    # NOTE: CoAttention (key/val/out proj) and self.fc are built in __init__ but never used
    # in forward() when update_method='res', so they carry no parameters here.

    # Inputs: two graphs with different node counts.
    x1 = jax.random.normal(keys[3], (B, N1, H), jnp.float32)
    x2 = jax.random.normal(keys[4], (B, N2, H), jnp.float32)
    a1 = (jax.random.uniform(keys[5], (B, N1, N1)) > 0.5).astype(jnp.float32)
    a2 = (jax.random.uniform(keys[6], (B, N2, N2)) > 0.5).astype(jnp.float32)
    m1 = (jax.random.uniform(keys[7], (B, N1)) > 0.3).astype(jnp.float32)
    m2 = (jax.random.uniform(keys[8], (B, N2)) > 0.3).astype(jnp.float32)
    # ensure at least one valid node per graph (avoid 0/0 in the masked-mean readout)
    m1 = m1.at[:, 0].set(1.0)
    m2 = m2.at[:, 0].set(1.0)

    g1, g2 = coattn_mpn_forward(x1, a1, m1, x2, a2, m2, params)
    g1 = jax.block_until_ready(g1)
    g2 = jax.block_until_ready(g2)
    assert g1.shape == (B, H) and g2.shape == (B, H)

    # 1) Structural check vs a precision-matched pure-JAX reference (same bf16 matmul policy).
    p1 = _reference_forward(x1, a1, m1, w_mps, w_r, b_r, bf16_matmul=True)
    p2 = _reference_forward(x2, a2, m2, w_mps, w_r, b_r, bf16_matmul=True)
    np.testing.assert_allclose(np.asarray(g1), np.asarray(p1), rtol=1e-2, atol=5e-2)
    np.testing.assert_allclose(np.asarray(g2), np.asarray(p2), rtol=1e-2, atol=5e-2)

    # 2) Numerical fidelity vs the full-f32 module semantics (relative L2, accounts for the
    #    bf16 MXU operands suggested by the perf review).
    r1 = _reference_forward(x1, a1, m1, w_mps, w_r, b_r, bf16_matmul=False)
    r2 = _reference_forward(x2, a2, m2, w_mps, w_r, b_r, bf16_matmul=False)

    def rel_l2(a, b):
        a = np.asarray(a, np.float64)
        b = np.asarray(b, np.float64)
        return np.linalg.norm(a - b) / np.linalg.norm(b)

    assert rel_l2(g1, r1) < 2e-2, f"g1 rel-L2 {rel_l2(g1, r1)}"
    assert rel_l2(g2, r2) < 2e-2, f"g2 rel-L2 {rel_l2(g2, r2)}"

    print("KERNEL_OK")
</pallas_src>

<mosaic_0001>
module attributes {stable_mosaic.version = 11 : i64} {
  func.func @_mpn_readout_kernel(%arg0: i32, %arg1: memref<2x16x128xf32, #tpu.memory_space<vmem>>, %arg2: memref<2x16x16xbf16, #tpu.memory_space<vmem>>, %arg3: memref<2x16x1xf32, #tpu.memory_space<vmem>>, %arg4: memref<2x16x1xf32, #tpu.memory_space<vmem>>, %arg5: memref<3x128x128xbf16, #tpu.memory_space<vmem>>, %arg6: memref<128x128xbf16, #tpu.memory_space<vmem>>, %arg7: memref<1x128xf32, #tpu.memory_space<vmem>>, %arg8: memref<2x1x128xf32, #tpu.memory_space<vmem>>) attributes {dimension_semantics = [#tpu.dimension_semantics<parallel>], iteration_bounds = array<i64: 2>, scalar_prefetch = 0 : i64, scratch_operands = 0 : i64, tpu.core_type = #tpu.core_type<tc>, window_params = [{transform_indices = @transform_0, window_bounds = array<i64: 2, 16, 128>}, {transform_indices = @transform_1, window_bounds = array<i64: 2, 16, 16>}, {transform_indices = @transform_2, window_bounds = array<i64: 2, 16, 1>}, {transform_indices = @transform_3, window_bounds = array<i64: 2, 16, 1>}, {pipeline_mode = #tpu.pipeline_mode<synchronous>, transform_indices = @transform_4, window_bounds = array<i64: 3, 128, 128>}, {pipeline_mode = #tpu.pipeline_mode<synchronous>, transform_indices = @transform_5, window_bounds = array<i64: 128, 128>}, {pipeline_mode = #tpu.pipeline_mode<synchronous>, transform_indices = @transform_6, window_bounds = array<i64: 1, 128>}, {transform_indices = @transform_7, window_bounds = array<i64: 2, 1, 128>}]} {
    %c0 = arith.constant 0 : index
    %c0_0 = arith.constant 0 : index
    %c0_1 = arith.constant 0 : index
    %0 = vector.load %arg1[%c0, %c0_0, %c0_1] : memref<2x16x128xf32, #tpu.memory_space<vmem>>, vector<2x16x128xf32>
    %c0_2 = arith.constant 0 : index
    %c0_3 = arith.constant 0 : index
    %c0_4 = arith.constant 0 : index
    %1 = vector.load %arg2[%c0_2, %c0_3, %c0_4] : memref<2x16x16xbf16, #tpu.memory_space<vmem>>, vector<2x16x16xbf16>
    %c0_5 = arith.constant 0 : index
    %c0_6 = arith.constant 0 : index
    %c0_7 = arith.constant 0 : index
    %2 = vector.load %arg3[%c0_5, %c0_6, %c0_7] : memref<2x16x1xf32, #tpu.memory_space<vmem>>, vector<2x16x1xf32>
    %c0_8 = arith.constant 0 : index
    %c0_9 = arith.constant 0 : index
    %c0_10 = arith.constant 0 : index
    %3 = vector.load %arg5[%c0_8, %c0_9, %c0_10] : memref<3x128x128xbf16, #tpu.memory_space<vmem>>, vector<1x128x128xbf16>
    %4 = vector.shape_cast %3 : vector<1x128x128xbf16> to vector<128x128xbf16>
    %5 = vector.shape_cast %0 : vector<2x16x128xf32> to vector<32x128xf32>
    %6 = arith.truncf %5 : vector<32x128xf32> to vector<32x128xbf16>
    %cst = arith.constant dense<0.000000e+00> : vector<32x128xf32>
    %7 = tpu.matmul %6, %4, %cst {dimension_numbers = #tpu.dot_dimension_numbers<[1], [0], [0], [1], [0, 0, 1, 1], [], []>} : vector<32x128xbf16>, vector<128x128xbf16>, vector<32x128xf32> -> vector<32x128xf32>
    %8 = vector.shape_cast %7 : vector<32x128xf32> to vector<2x16x128xf32>
    %9 = arith.truncf %8 : vector<2x16x128xf32> to vector<2x16x128xbf16>
    "tpu.trace_start"() <{level = 10 : i32, message = "bnm,bmh->bnh"}> : () -> ()
    %cst_11 = arith.constant dense<0.000000e+00> : vector<2x16x128xf32>
    %10 = tpu.matmul %1, %9, %cst_11 {dimension_numbers = #tpu.dot_dimension_numbers<[2], [1], [1], [2], [0, 0, 0, 1, 1, 2], [0], [0]>} : vector<2x16x16xbf16>, vector<2x16x128xbf16>, vector<2x16x128xf32> -> vector<2x16x128xf32>
    "tpu.trace_stop"() : () -> ()
    %11 = vector.broadcast %2 : vector<2x16x1xf32> to vector<2x16x128xf32>
    %12 = arith.mulf %10, %11 : vector<2x16x128xf32>
    %13 = arith.addf %0, %12 : vector<2x16x128xf32>
    %c1 = arith.constant 1 : index
    %c0_12 = arith.constant 0 : index
    %c0_13 = arith.constant 0 : index
    %14 = vector.load %arg5[%c1, %c0_12, %c0_13] : memref<3x128x128xbf16, #tpu.memory_space<vmem>>, vector<1x128x128xbf16>
    %15 = vector.shape_cast %14 : vector<1x128x128xbf16> to vector<128x128xbf16>
    %16 = vector.shape_cast %13 : vector<2x16x128xf32> to vector<32x128xf32>
    %17 = arith.truncf %16 : vector<32x128xf32> to vector<32x128xbf16>
    %cst_14 = arith.constant dense<0.000000e+00> : vector<32x128xf32>
    %18 = tpu.matmul %17, %15, %cst_14 {dimension_numbers = #tpu.dot_dimension_numbers<[1], [0], [0], [1], [0, 0, 1, 1], [], []>} : vector<32x128xbf16>, vector<128x128xbf16>, vector<32x128xf32> -> vector<32x128xf32>
    %19 = vector.shape_cast %18 : vector<32x128xf32> to vector<2x16x128xf32>
    %20 = arith.truncf %19 : vector<2x16x128xf32> to vector<2x16x128xbf16>
    "tpu.trace_start"() <{level = 10 : i32, message = "bnm,bmh->bnh"}> : () -> ()
    %cst_15 = arith.constant dense<0.000000e+00> : vector<2x16x128xf32>
    %21 = tpu.matmul %1, %20, %cst_15 {dimension_numbers = #tpu.dot_dimension_numbers<[2], [1], [1], [2], [0, 0, 0, 1, 1, 2], [0], [0]>} : vector<2x16x16xbf16>, vector<2x16x128xbf16>, vector<2x16x128xf32> -> vector<2x16x128xf32>
    "tpu.trace_stop"() : () -> ()
    %22 = vector.broadcast %2 : vector<2x16x1xf32> to vector<2x16x128xf32>
    %23 = arith.mulf %21, %22 : vector<2x16x128xf32>
    %24 = arith.addf %13, %23 : vector<2x16x128xf32>
    %c2 = arith.constant 2 : index
    %c0_16 = arith.constant 0 : index
    %c0_17 = arith.constant 0 : index
    %25 = vector.load %arg5[%c2, %c0_16, %c0_17] : memref<3x128x128xbf16, #tpu.memory_space<vmem>>, vector<1x128x128xbf16>
    %26 = vector.shape_cast %25 : vector<1x128x128xbf16> to vector<128x128xbf16>
    %27 = vector.shape_cast %24 : vector<2x16x128xf32> to vector<32x128xf32>
    %28 = arith.truncf %27 : vector<32x128xf32> to vector<32x128xbf16>
    %cst_18 = arith.constant dense<0.000000e+00> : vector<32x128xf32>
    %29 = tpu.matmul %28, %26, %cst_18 {dimension_numbers = #tpu.dot_dimension_numbers<[1], [0], [0], [1], [0, 0, 1, 1], [], []>} : vector<32x128xbf16>, vector<128x128xbf16>, vector<32x128xf32> -> vector<32x128xf32>
    %30 = vector.shape_cast %29 : vector<32x128xf32> to vector<2x16x128xf32>
    %31 = arith.truncf %30 : vector<2x16x128xf32> to vector<2x16x128xbf16>
    "tpu.trace_start"() <{level = 10 : i32, message = "bnm,bmh->bnh"}> : () -> ()
    %cst_19 = arith.constant dense<0.000000e+00> : vector<2x16x128xf32>
    %32 = tpu.matmul %1, %31, %cst_19 {dimension_numbers = #tpu.dot_dimension_numbers<[2], [1], [1], [2], [0, 0, 0, 1, 1, 2], [0], [0]>} : vector<2x16x16xbf16>, vector<2x16x128xbf16>, vector<2x16x128xf32> -> vector<2x16x128xf32>
    "tpu.trace_stop"() : () -> ()
    %33 = vector.broadcast %2 : vector<2x16x1xf32> to vector<2x16x128xf32>
    %34 = arith.mulf %32, %33 : vector<2x16x128xf32>
    %35 = arith.addf %24, %34 : vector<2x16x128xf32>
    %36 = vector.shape_cast %35 : vector<2x16x128xf32> to vector<32x128xf32>
    %37 = arith.truncf %36 : vector<32x128xf32> to vector<32x128xbf16>
    %c0_20 = arith.constant 0 : index
    %c0_21 = arith.constant 0 : index
    %38 = vector.load %arg6[%c0_20, %c0_21] : memref<128x128xbf16, #tpu.memory_space<vmem>>, vector<128x128xbf16>
    %cst_22 = arith.constant dense<0.000000e+00> : vector<32x128xf32>
    %39 = tpu.matmul %37, %38, %cst_22 {dimension_numbers = #tpu.dot_dimension_numbers<[1], [0], [0], [1], [0, 0, 1, 1], [], []>} : vector<32x128xbf16>, vector<128x128xbf16>, vector<32x128xf32> -> vector<32x128xf32>
    %c0_23 = arith.constant 0 : index
    %c0_24 = arith.constant 0 : index
    %40 = vector.load %arg7[%c0_23, %c0_24] : memref<1x128xf32, #tpu.memory_space<vmem>>, vector<1x128xf32>
    %41 = vector.broadcast %40 : vector<1x128xf32> to vector<32x128xf32>
    %42 = arith.addf %39, %41 : vector<32x128xf32>
    %cst_25 = arith.constant 0.000000e+00 : f32
    %43 = vector.broadcast %cst_25 : f32 to vector<32x128xf32>
    %44 = arith.cmpf oge, %42, %43 : vector<32x128xf32>
    %cst_26 = arith.constant 0.00999999977 : f32
    %45 = vector.broadcast %cst_26 : f32 to vector<32x128xf32>
    %46 = arith.mulf %45, %42 : vector<32x128xf32>
    %47 = arith.select %44, %42, %46 : vector<32x128xi1>, vector<32x128xf32>
    %48 = vector.shape_cast %47 : vector<32x128xf32> to vector<2x16x128xf32>
    %c0_27 = arith.constant 0 : index
    %c0_28 = arith.constant 0 : index
    %c0_29 = arith.constant 0 : index
    %49 = vector.load %arg4[%c0_27, %c0_28, %c0_29] : memref<2x16x1xf32, #tpu.memory_space<vmem>>, vector<2x16x1xf32>
    %50 = vector.broadcast %49 : vector<2x16x1xf32> to vector<2x16x128xf32>
    %51 = arith.mulf %48, %50 : vector<2x16x128xf32>
    %cst_30 = arith.constant dense<0.000000e+00> : vector<2x128xf32>
    %52 = vector.multi_reduction <add>, %51, %cst_30 [1] : vector<2x16x128xf32> to vector<2x128xf32>
    %53 = vector.shape_cast %52 : vector<2x128xf32> to vector<2x1x128xf32>
    %c0_31 = arith.constant 0 : index
    %c0_32 = arith.constant 0 : index
    %c0_33 = arith.constant 0 : index
    %54 = vector.load %arg8[%c0_31, %c0_32, %c0_33] : memref<2x1x128xf32, #tpu.memory_space<vmem>>, vector<2x1x128xf32>
    tpu.vector_store %arg8[%c0_31, %c0_32, %c0_33], %53 {strides = array<i32>} : memref<2x1x128xf32, #tpu.memory_space<vmem>>, vector<2x1x128xf32>,
    return
  }
  func.func @transform_0(%arg0: i32) -> (i32, i32, i32) {
    %c0_i32 = arith.constant 0 : i32
    %c0_i32_0 = arith.constant 0 : i32
    %c0_i32_1 = arith.constant 0 : i32
    return %arg0, %c0_i32, %c0_i32_0 : i32, i32, i32
  }
  func.func @transform_1(%arg0: i32) -> (i32, i32, i32) {
    %c0_i32 = arith.constant 0 : i32
    %c0_i32_0 = arith.constant 0 : i32
    %c0_i32_1 = arith.constant 0 : i32
    return %arg0, %c0_i32, %c0_i32_0 : i32, i32, i32
  }
  func.func @transform_2(%arg0: i32) -> (i32, i32, i32) {
    %c0_i32 = arith.constant 0 : i32
    %c0_i32_0 = arith.constant 0 : i32
    %c0_i32_1 = arith.constant 0 : i32
    return %arg0, %c0_i32, %c0_i32_0 : i32, i32, i32
  }
  func.func @transform_3(%arg0: i32) -> (i32, i32, i32) {
    %c0_i32 = arith.constant 0 : i32
    %c0_i32_0 = arith.constant 0 : i32
    %c0_i32_1 = arith.constant 0 : i32
    return %arg0, %c0_i32, %c0_i32_0 : i32, i32, i32
  }
  func.func @transform_4(%arg0: i32) -> (i32, i32, i32) {
    %c0_i32 = arith.constant 0 : i32
    %c0_i32_0 = arith.constant 0 : i32
    %c0_i32_1 = arith.constant 0 : i32
    %c0_i32_2 = arith.constant 0 : i32
    return %c0_i32, %c0_i32_0, %c0_i32_1 : i32, i32, i32
  }
  func.func @transform_5(%arg0: i32) -> (i32, i32) {
    %c0_i32 = arith.constant 0 : i32
    %c0_i32_0 = arith.constant 0 : i32
    %c0_i32_1 = arith.constant 0 : i32
    return %c0_i32, %c0_i32_0 : i32, i32
  }
  func.func @transform_6(%arg0: i32) -> (i32, i32) {
    %c0_i32 = arith.constant 0 : i32
    %c0_i32_0 = arith.constant 0 : i32
    %c0_i32_1 = arith.constant 0 : i32
    return %c0_i32, %c0_i32_0 : i32, i32
  }
  func.func @transform_7(%arg0: i32) -> (i32, i32, i32) {
    %c0_i32 = arith.constant 0 : i32
    %c0_i32_0 = arith.constant 0 : i32
    %c0_i32_1 = arith.constant 0 : i32
    return %arg0, %c0_i32, %c0_i32_0 : i32, i32, i32
  }
}

</mosaic_0001>

<bundles_post_ra>
// kernel: tpu_custom_call.1
= control target key start
LH: loop header
LB: loop body
LE: loop exit
PB: predicated region body
PF: predicated region fallthrough
CT: control target
= control target key end

     0   :  { %s2197_s0 = inlined_call_operand.vmem [shape: f32[4,16,128], index: 0, kind: input, shape index: {}]   ;;  %s2198_s1 = inlined_call_operand.hbm [shape: bf16[4,16,16], index: 1, kind: input, shape index: {}]   ;;  %s2199_s2 = inlined_call_operand.vmem [shape: f32[4,16,1], index: 2, kind: input, shape index: {}]   ;;  %s2200_s3 = inlined_call_operand.vmem [shape: f32[4,16,1], index: 3, kind: input, shape index: {}]   ;;  %s2201_s4 = inlined_call_operand.hbm [shape: bf16[3,128,128], index: 4, kind: input, shape index: {}]   ;;  %s2202_s5 = inlined_call_operand.vmem [shape: bf16[128,128], index: 5, kind: input, shape index: {}]   ;;  %s2203_s6 = inlined_call_operand.vmem [shape: f32[1,128], index: 6, kind: input, shape index: {}]   ;;  %s2204_s7 = inlined_call_operand.hbm [shape: f32[4,1,128], index: 7, kind: output, shape index: {}]  }
   0x1   :  { %2211 = sst [smem:[#allocation11_spill]] %s2201_s4 }
   0x2   :  { %12 = vsyncpa [#allocation3], 0 }
   0x3   :  { %14 = vsyncpa [#allocation3 + $0x1], 0 }
   0x4   :  { %15 = vsyncpa [#allocation6], 0 }
   0x5   :  { %16 = vsyncpa [#allocation4], 0 }
   0x6   :  { %18 = vsyncpa [#allocation4 + $0x1], 0  ;;  %s1889_s24 = smov 0   ;;  %s1891_s25 = smov 0  }
   0x7   :  { %s1893_s26 = smov 0   ;;  %s1895_s27 = smov 0  }
   0x8 LB: > { %s1910_s28 = sadd.s32 4294967295, %s1837_s27   ;;  %s1374_s29 = sadd.s32 4294967294, %s1837_s27   ;;  %s1837_s27 = sphi %s1895_s27, %s2232_s27   ;;  %s1833_s26 = sphi %s1893_s26, %s2231_s26   ;;  %s1829_s25 = sphi %s1891_s25, %s2230_s25   ;;  %s1825_s24 = sphi %s1889_s24, %s2229_s24  }
   0x9   : > { %p70_p0 = scmp.ne.s32.totalorder %s1829_s25, %s1825_s24  ;;  %p2206_p1 = scmp.eq.s32.totalorder %s1910_s28, 0 }
   0xa   : > { %p215_p3 = scmp.eq.s32.totalorder %s1374_s29, 1  ;;  %p1375_p5 = scmp.ge.s32.totalorder %s1837_s27, 1 }
   0xb   : > { %p1919_p4 = por %p2206_p1, %p70_p0  ;;  %p222_p7 = scmp.lt.s32.totalorder %s1837_s27, 3 }
   0xc   : > { %p1924_p6 = por %p215_p3, %p70_p0  ;;  %s1839_s10 = smov [#allocation5]  }
   0xd   : > { %s2212_s30 = scalar_select %p1919_p4, 1, 0 }
   0xe   : > { %s2213_s8 = scalar_select %p1924_p6, 1, 0 }
   0xf   : > { %p1929_p8 = pnand %p1375_p5, %p222_p7  ;;  %s234_s11 = sshll.u32 %s1839_s10, 4  ;;  %s235_s11 = int_to_ptr.vmem [resolvable:$true] %s234_s11 }
  0x10   : > { %s1943_s13 = sadd.s32 1, %s1837_s27   ;;  %s57_s14 = sadd.s32 1, %s1833_s26 }
  0x11   : > { %s2214_s9 = scalar_select %p1929_p8, 1, 0 }
  0x12   : > { %p1623_p9 = pneg %p1929_p8  ;;  %s54_s15 = ssub.s32 %s1837_s27, %s1943_s13 }
  0x13   : > { %s1726_s16 = scalar_lea.vmem %s235_s11, 3072  ;;  %p1734_p5 = scmp.lt.s32.totalorder %s235_s11, %s235_s11 }
  0x14   : > { %p1938_p11 = pnand %p1623_p9, %p2206_p1  ;;  %p1727_p13 = scmp.ne.s32.totalorder %s235_s11, %s1726_s16 }
  0x15   : > { %p1735_p7 = scmp.lt.s32.totalorder %s1726_s16, %s1726_s16 }
  0x16   : > { %p1717_p12 = pneg %p1938_p11 }
  0x17   : > { %p1736_p10 = por %p1735_p7, %p1734_p5 }
  0x18   : > { %p1729_p0 = pnand %p1727_p13, %p1717_p12 }
  0x1a   : > { %p1730_p3 = pneg %p1729_p0 }
  0x1c   : > { %p1737_p2 = pnand %p1736_p10, %p1730_p3 }
  0x1e   : > { %1740 = shalt.err (!%p1737_p2)
}
  0x1f   : > { %s2205_s17 = smov 64   ;;  %s2207_s18 = smov 4  }
  0x20   : > { %s2216_s4 = sld [smem:[#allocation11_spill]]  ;;  %p55_p2 = scmp.eq.s32.totalorder %s54_s15, 0 }
  0x21   : > { %p64_p9 = scmp.ne.s32.totalorder %s1833_s26, %s1829_s25  ;;  %p65_p10 = scmp.eq.s32.totalorder %s1837_s27, 0 }
  0x22   : > { %p1636_p12 = scmp.lt.s32.totalorder %s1837_s27, 2  ;;  %p2217_p0 = scmp.eq.s32.totalorder %s1910_s28, 1 }
  0x23   : > { %s1963_s21 = scalar_select %p55_p2, %s1833_s26, %s57_s14  }
  0x24   : > { %p66_p13 = por %p65_p10, %p64_p9  ;;  %p1967_p3 = por %p2217_p0, %p64_p9 }
  0x25   : > { %s264_s23 = sand.u32 1, %s1833_s26   ;;  %s1442_s29 = sshll.u32 %s1837_s27, 8 }
  0x26   : > { %1626 = dma.hbm_to_vmem [thread:$0]  (!%p1938_p11), %s2216_s4, 3072, %s235_s11, [#allocation6], %s2205_s17, %s2205_s17, %s2207_s18  }
  0x27   : > { %s2218_s22 = scalar_select %p1967_p3, 1, 0 }
  0x28   : > { %s1378_s10 = sshll.u32 %s264_s23, 4  ;;  %s1976_s19 = scalar_lea.hbm %s2198_s1, %s1442_s29 }
  0x29   : > { %s268_s11 = scalar_lea.vmem [#allocation2], %s1378_s10  ;;  %p1978_p11 = pnand %p1636_p12, %p66_p13 }
  0x2a   : > { %s276_s14 = sshll.u32 %s268_s11, 4  ;;  %s1984_s20 = scalar_lea.sflag [#allocation3], %s264_s23  ;;  %s1982_s14 = int_to_ptr.vmem [resolvable:$true] %s276_s14 }
  0x2b   : > { %s1741_s17 = scalar_lea.hbm %s1976_s19, 256  ;;  %p1743_p7 = pneg %p1978_p11 }
  0x2c   : > { %p1742_p5 = scmp.ne.s32.totalorder %s1976_s19, %s1741_s17  ;;  %s1746_s10 = scalar_lea.hbm %s2198_s1, 512 }
  0x2d   : > { %p1747_p10 = scmp.lt.s32.totalorder %s1976_s19, %s2198_s1  ;;  %p1748_p12 = scmp.lt.s32.totalorder %s1746_s10, %s1741_s17 }
  0x2e   : > { %p1744_p2 = pnand %p1743_p7, %p1742_p5 }
  0x2f   : > { %p1749_p13 = por %p1748_p12, %p1747_p10 }
  0x30   : > { %p1745_p9 = pneg %p1744_p2 }
  0x32   : > { %p1750_p0 = pnand %p1749_p13, %p1745_p9 }
  0x34   : > { %1753 = shalt.err (!%p1750_p0)
}
  0x35   : > { %s1754_s23 = scalar_lea.vmem %s1982_s14, 256  ;;  %s1842_s18 = smov [#allocation2]  }
  0x36   : > { %p1755_p1 = scmp.ne.s32.totalorder %s1982_s14, %s1754_s23  ;;  %s1759_s4 = sshll.u32 %s1842_s18, 4  ;;  %s1760_s4 = int_to_ptr.vmem [resolvable:$false] %s1759_s4 }
  0x37   : > { %s1761_s29 = scalar_lea.vmem %s1760_s4, 512  ;;  %p1762_p2 = scmp.lt.s32.totalorder %s1982_s14, %s1760_s4 }
  0x38   : > { %p1757_p6 = pnand %p1755_p1, %p1743_p7  ;;  %p1763_p3 = scmp.lt.s32.totalorder %s1761_s29, %s1754_s23 }
  0x3a   : > { %p1758_p5 = pneg %p1757_p6  ;;  %p1764_p4 = por %p1763_p3, %p1762_p2 }
  0x3c   : > { %p1765_p8 = pnand %p1764_p4, %p1758_p5 }
  0x3e   : > { %1768 = shalt.err (!%p1765_p8)
}
  0x3f   : > { %s2220_s17 = smov 4   ;;  %s2221_s12 = smov 64  }
  0x40   : > { %1630 = dma.hbm_to_vmem [thread:$0]  (!%p1978_p11), %s1976_s19, 256, %s1982_s14, %s1984_s20, %s2221_s12, %s2221_s12, %s2220_s17  }
  0x41   : > { %p2222_p1 = scmp.ne.s32.totalorder %s2214_s9, 0 }
  0x42   : > { %s2011_s18 = sand.u32 (!%p2222_p1), 1, %s1829_s25   ;;  %p2223_p4 = scmp.ne.s32.totalorder (!%p2222_p1), %s2212_s30, 0 }
  0x43   : > { %308 = sbr.rel (%p2222_p1) target bundleno = 1581 (0x62d), region = 48  ;;  %s1383_s4 = sshll.u32 (!%p2222_p1), %s2011_s18, 4 }
  0x44   : > { %s311_s10 = scalar_lea.sflag (!%p2222_p1), [#allocation3], %s2011_s18  ;;  %s2015_s16 = scalar_lea.vmem (!%p2222_p1), [#allocation2], %s1383_s4 }
  0x48   : > { %1812 = dma.done.wait (%p2223_p4), %s311_s10, 256  }
  0x49   : > { %1814 = vsyncadd (%p2223_p4), %s311_s10, 4294967040  ;;  %p2224_p6 = scmp.eq.s32.totalorder %s1910_s28, 0 }
  0x4b   : > { %1816 = dma.done.wait (%p2224_p6), [#allocation6], 3072   ;;  %p2225_p8 = pmov %p2224_p6 }
  0x4c   : > { %s1386_s9 = sshll.u32 %s1910_s28, 1  ;;  %v1681_v0 = vld [vmem:[#allocation5 + $0x38] sm:$0xff]   ;;  %v1682_v1 = vld [vmem:[#allocation5 + $0x30] sm:$0xff]   ;;  %v1683_v2 = vld [vmem:[#allocation5 + $0x28] sm:$0xff]   ;;  %v1843_v14 = vmov 0.0   ;;  %vm1844_vm0 = vmmov 0  }
  0x4d   : > { %1818 = vsyncadd (%p2225_p8), [#allocation6], 4294964224  ;;  %p368_p3 = scmp.lt.s32.totalorder %s1386_s9, 3  ;;  %1499 = vmatprep.subr.bf16.mxu0 %v1681_v0  ;;  %v1684_v3 = vld [vmem:[#allocation5 + $0x20] sm:$0xff]   ;;  %v1685_v7 = vld [vmem:[#allocation5 + $0x18] sm:$0xff]   ;;  %1519 = vmatprep.subr.bf16.mxu1 %v1843_v14  ;;  %v1845_v15 = vmov 0  }
  0x4e   : > { %1500 = vmatpush3.bf16.msra.mxu0 %v1681_v0  ;;  %v1686_v8 = vld [vmem:[#allocation5 + $0x10] sm:$0xff]   ;;  %v1687_v9 = vld [vmem:[#allocation5 + $0x8] sm:$0xff]   ;;  %v1688_v10 = vld [vmem:[#allocation5] sm:$0xff]   ;;  %1521 = vmatprep.mubr.msk.bf16.mxu1 %vm1844_vm0, %v1843_v14  ;;  %vm525_vm1 = vcmask 130048   ;;  %s1446_s30 = sshll.u32 %s1910_s28, 5  ;;  %s1242_s29 = scalar_lea.sflag [#allocation4], %s2011_s18 }
  0x4f   : > { %s2234_s9 = smov (!%p368_p3, %s1386_s9), 3  ;;  %1501 = vmatprep.subr.bf16.mxu0 %v1682_v1  ;;  %1679 = vset.pattern.permute.xlu0 %v1845_v15  ;;  %v2059_v29 = vld [vmem:[%s2015_s16] sm:$0xff]   ;;  %v1691_v30 = vld [vmem:[#allocation5 + $0x78] sm:$0xff]   ;;  %v1693_v34 = vld [vmem:[#allocation5 + $0x68] sm:$0xff]   ;;  %p2226_p7 = scmp.ne.s32.totalorder %s2218_s22, 0 }
  0x50   : > { %s2026_s19 = sshll.u32 %s2234_s9, 4  ;;  %1680 = vset.pattern.permute.xlu1 %v1845_v15  ;;  %v2067_v32 = vld [vmem:[%s2015_s16 + $0x8] sm:$0xff]   ;;  %v1692_v33 = vld [vmem:[#allocation5 + $0x70] sm:$0xff]   ;;  %v1694_v35 = vld [vmem:[#allocation5 + $0x60] sm:$0xff]   ;;  %s1846_s28 = smov [#allocation7]  }
  0x51   : > { %s372_s15 = scalar_lea.vmem %s2197_s0, %s2026_s19  ;;  %s380_s23 = scalar_lea.vmem %s2199_s2, %s2026_s19  ;;  %v1695_v36 = vld [vmem:[#allocation5 + $0x58] sm:$0xff]   ;;  %v1696_v37 = vld [vmem:[#allocation5 + $0x50] sm:$0xff]   ;;  %v1697_v38 = vld [vmem:[#allocation5 + $0x48] sm:$0xff]  }
  0x52   : > { %1502 = vmatpush3.bf16.msra.mxu0 %v1682_v1  ;;  %v2032_v4 = vld [vmem:[%s372_s15] sm:$0xff]  ;;  %v2034_v5 = vld [vmem:[%s372_s15 + $0x8] sm:$0xff]  ;;  %v2038_v11 = vld [vmem:[%s372_s15 + $0x10] sm:$0xff]  ;;  %s387_s12 = scalar_lea.vmem %s2200_s3, %s2026_s19  ;;  %s1385_s19 = sshll.u32 %s2011_s18, 1 }
  0x53   : > { %1503 = vmatprep.subr.bf16.mxu0 %v1683_v2  ;;  %v419_v6 = vpack.c.bf16 %v2034_v5, %v2032_v4  ;;  %v2040_v12 = vld [vmem:[%s372_s15 + $0x18] sm:$0xff]  ;;  %v399_v16 = vld [vmem:[%s380_s23] sm:$0xff]  ;;  %v401_v17 = vld [vmem:[%s380_s23 + $0x10] sm:$0xff]  ;;  %s366_s14 = scalar_lea.vmem [#allocation7], %s1385_s19 }
  0x54   : > { %v420_v13 = vpack.c.bf16 %v2040_v12, %v2038_v11  ;;  %621 = vperm.xlu0 %1679, %v399_v16   ;;  %631 = vperm.xlu1 %1680, %v401_v17   ;;  %v400_v18 = vld [vmem:[%s380_s23 + $0x8] sm:$0xff]  ;;  %v402_v19 = vld [vmem:[%s380_s23 + $0x18] sm:$0xff]  ;;  %v1197_v20 = vld [vmem:[%s387_s12] sm:$0xff]  ;;  %s1255_s15 = sshll.u32 %s366_s14, 4  ;;  %s2152_s23 = scalar_lea.hbm %s2204_s7, %s1446_s30  ;;  %s2154_s15 = int_to_ptr.vmem [resolvable:$true] %s1255_s15 }
  0x55   : > { %1515 = vmatprep.mubr.bf16.mxu0 %v419_v6  ;;  %v1198_v21 = vld [vmem:[%s387_s12 + $0x8] sm:$0xff]  ;;  %v1199_v22 = vld [vmem:[%s387_s12 + $0x10] sm:$0xff]  ;;  %v1200_v23 = vld [vmem:[%s387_s12 + $0x18] sm:$0xff]  ;;  %s1769_s17 = scalar_lea.vmem %s2154_s15, 32  ;;  %s1773_s12 = sshll.u32 %s1846_s28, 4  ;;  %s1774_s12 = int_to_ptr.vmem [resolvable:$false] %s1773_s12 }
  0x56   : > { %1504 = vmatpush3.bf16.msra.mxu0 %v1683_v2  ;;  %v1698_v39 = vld [vmem:[#allocation5 + $0x40] sm:$0xff]   ;;  %v1701_v6 = vld [vmem:[#allocation5 + $0xa8] sm:$0xff]   ;;  %p1770_p11 = scmp.ne.s32.totalorder %s2154_s15, %s1769_s17  ;;  %s1775_s4 = scalar_lea.vmem %s1774_s12, 64 }
  0x57   : > { %1505 = vmatprep.subr.bf16.mxu0 %v1684_v3  ;;  %p1776_p12 = scmp.lt.s32.totalorder %s2154_s15, %s1774_s12  ;;  %p1777_p13 = scmp.lt.s32.totalorder %s1775_s4, %s1769_s17 }
  0x58   : > { %626 = vperm.xlu0 %1679, %v400_v18   ;;  %636 = vperm.xlu1 %1680, %v402_v19   ;;  %p1771_p9 = pnand %p1770_p11, %p2226_p7 }
  0x59   : > { %p1778_p0 = por %p1777_p13, %p1776_p12 }
  0x5a   : > { %1506 = vmatpush3.bf16.msra.mxu0 %v1684_v3  ;;  %v1699_v3 = vld [vmem:[#allocation5 + $0xb8] sm:$0xff]   ;;  %p1772_p10 = pneg %p1771_p9 }
  0x5b   : > { %1507 = vmatprep.subr.bf16.mxu0 %v1685_v7 }
  0x5c   : > { %1203 = vperm.xlu0 %1679, %v1197_v20   ;;  %1208 = vperm.xlu1 %1680, %v1198_v21   ;;  %p1779_p5 = pnand %p1778_p0, %p1772_p10 }
  0x5e   : > { %1508 = vmatpush3.bf16.msra.mxu0 %v1685_v7  ;;  %v1702_v7 = vld [vmem:[#allocation5 + $0xa0] sm:$0xff]  }
  0x5f   : > { %1509 = vmatprep.subr.bf16.mxu0 %v1686_v8 }
  0x60   : > { %1213 = vperm.xlu0 %1679, %v1199_v22   ;;  %1218 = vperm.xlu1 %1680, %v1200_v23  }
  0x62   : > { %1510 = vmatpush3.bf16.msra.mxu0 %v1686_v8  ;;  %v1703_v8 = vld [vmem:[#allocation5 + $0x98] sm:$0xff]  }
  0x63   : > { %1511 = vmatprep.subr.bf16.mxu0 %v1687_v9 }
  0x66   : > { %1512 = vmatpush3.bf16.msra.mxu0 %v1687_v9  ;;  %v1704_v9 = vld [vmem:[#allocation5 + $0x90] sm:$0xff]  }
  0x67   : > { %1513 = vmatprep.subr.bf16.mxu0 %v1688_v10 }
  0x6a   : > { %1514 = vmatpush3.bf16.msra.mxu0 %v1688_v10  ;;  %v1705_v10 = vld [vmem:[#allocation5 + $0x88] sm:$0xff]  }
  0x6b   : > { %1557 = vmatprep.subr.bf16.mxu0 %v1843_v14 }
  0x6d   : > { %1516 = vmatmul.mubr.bf16.vlgmr.msra.gmra.mxu0 %v420_v13 }
  0x6e   : > { %1559 = vmatprep.mubr.msk.bf16.mxu0 %vm1844_vm0, %v1843_v14 }
  0xcf   : > { %v2072_v40 = vpop.permute.xlu0 %621  ;;  %v2078_v47 = vpop.permute.xlu1 %631 }
  0xd3   : > { %v2075_v44 = vpop.permute.xlu0 %626  ;;  %v2089_v55 = vpop.permute.xlu1 %636 }
 0x12d   : > { %v1517_v24 = vpop.f32.mrf.mxu0 }
 0x12f   : > { %v503_v25 = vpop.f32.mrf.mxu0 }
 0x131   : > { %v1518_v26 = vpop.f32.mrf.mxu0 }
 0x132   : > { %v519_v31 = vpack.c.bf16 %v1518_v26, %v1517_v24 }
 0x133   : > { %v506_v27 = vpop.f32.mrf.mxu0 }
 0x134   : > { %v518_v28 = vpack.c.bf16 %v506_v27, %v503_v25 }
 0x136   : > { %1520 = vmatpush3.bf16.msra.mxu1 %v518_v28 }
 0x137   : > { %1525 = vmatprep.subr.bf16.mxu1 %v1843_v14 }
 0x139   : > { %1522 = vmatmul.mubr.msk.bf16.vlgmr.msra.gmra.mxu1 %vm525_vm1, %v2059_v29 }
 0x13a   : > { %1526 = vmatpush3.bf16.msra.mxu1 %v519_v31  ;;  %1527 = vmatprep.mubr.msk.bf16.mxu1 %vm1844_vm0, %v1843_v14 }
 0x13b   : > { %1531 = vmatprep.subr.bf16.mxu1 %v1691_v30 }
 0x141   : > { %1528 = vmatmul.mubr.msk.bf16.vlgmr.msra.gmra.mxu1 %vm525_vm1, %v2067_v32 }
 0x142   : > { %1532 = vmatpush3.bf16.msra.mxu1 %v1691_v30 }
 0x143   : > { %1533 = vmatprep.subr.bf16.mxu1 %v1692_v33 }
 0x146   : > { %1534 = vmatpush3.bf16.msra.mxu1 %v1692_v33 }
 0x147   : > { %1535 = vmatprep.subr.bf16.mxu1 %v1693_v34 }
 0x14a   : > { %1536 = vmatpush3.bf16.msra.mxu1 %v1693_v34 }
 0x14b   : > { %1537 = vmatprep.subr.bf16.mxu1 %v1694_v35 }
 0x14e   : > { %1538 = vmatpush3.bf16.msra.mxu1 %v1694_v35 }
 0x14f   : > { %1539 = vmatprep.subr.bf16.mxu1 %v1695_v36 }
 0x152   : > { %1540 = vmatpush3.bf16.msra.mxu1 %v1695_v36 }
 0x153   : > { %1541 = vmatprep.subr.bf16.mxu1 %v1696_v37 }
 0x156   : > { %1542 = vmatpush3.bf16.msra.mxu1 %v1696_v37 }
 0x157   : > { %1543 = vmatprep.subr.bf16.mxu1 %v1697_v38 }
 0x15a   : > { %1544 = vmatpush3.bf16.msra.mxu1 %v1697_v38  ;;  %v1707_v38 = vld [vmem:[%s2202_s5 + $0x38] sm:$0xff]  }
 0x15b   : > { %1545 = vmatprep.subr.bf16.mxu1 %v1698_v39 }
 0x15e   : > { %1546 = vmatpush3.bf16.msra.mxu1 %v1698_v39 }
 0x15f   : > { %1551 = vmatprep.subr.bf16.mxu1 %v1843_v14 }
 0x1f9   : > { %v563_v41 = vpop.f32.mrf.mxu1 }
 0x1fa   : > { %v639_v43 = vmul.f32 %v2072_v40, %v563_v41  ;;  %v1708_v41 = vld [vmem:[%s2202_s5 + $0x30] sm:$0xff]  }
 0x1fb   : > { %v1523_v42 = vpop.f32.mrf.mxu1 }
 0x1fc   : > { %v2081_v49 = vadd.f32 %v639_v43, %v2032_v4  ;;  %v1709_v42 = vld [vmem:[%s2202_s5 + $0x28] sm:$0xff]  }
 0x1fd   : > { %v566_v45 = vpop.f32.mrf.mxu1  ;;  %v1713_v43 = vld [vmem:[%s2202_s5 + $0x8] sm:$0xff]  }
 0x1fe   : > { %v640_v46 = vmul.f32 %v2075_v44, %v566_v45  ;;  %v1714_v45 = vld [vmem:[%s2202_s5] sm:$0xff]  }
 0x1ff   : > { %v1524_v48 = vpop.f32.mrf.mxu1 }
 0x200   : > { %v2084_v50 = vadd.f32 %v640_v46, %v2034_v5  ;;  %v1700_v5 = vld [vmem:[#allocation5 + $0xb0] sm:$0xff]  }
 0x201   : > { %v612_v51 = vpop.f32.mrf.mxu1 }
 0x202   : > { %v664_v52 = vpack.c.bf16 %v2084_v50, %v2081_v49  ;;  %v641_v54 = vmul.f32 %v2078_v47, %v612_v51 }
 0x203   : > { %v1529_v53 = vpop.f32.mrf.mxu1 }
 0x204   : > { %1547 = vmatprep.mubr.bf16.mxu1 %v664_v52  ;;  %v645_v59 = vadd.f32 %v641_v54, %v2038_v11  ;;  %v1706_v11 = vld [vmem:[#allocation5 + $0x80] sm:$0xff]  }
 0x205   : > { %v615_v56 = vpop.f32.mrf.mxu1 }
 0x206   : > { %v642_v57 = vmul.f32 %v2089_v55, %v615_v56 }
 0x207   : > { %v1530_v58 = vpop.f32.mrf.mxu1 }
 0x208   : > { %v646_v60 = vadd.f32 %v642_v57, %v2040_v12 }
 0x20a   : > { %v665_v61 = vpack.c.bf16 %v646_v60, %v645_v59 }
 0x20c   : > { %1548 = vmatmul.mubr.bf16.vlgmr.msra.gmra.mxu1 %v665_v61 }
 0x20d   : > { %1553 = vmatprep.mubr.msk.bf16.mxu1 %vm1844_vm0, %v1843_v14 }
 0x2cc   : > { %v1549_v62 = vpop.f32.mrf.mxu1 }
 0x2ce   : > { %v748_v63 = vpop.f32.mrf.mxu1 }
 0x2d0   : > { %v1550_v0 = vpop.f32.mrf.mxu1 }
 0x2d1   : > { %v764_v1 = vpack.c.bf16 %v1550_v0, %v1549_v62 }
 0x2d2   : > { %v751_v2 = vpop.f32.mrf.mxu1 }
 0x2d3   : > { %v763_v4 = vpack.c.bf16 %v751_v2, %v748_v63  ;;  %1558 = vmatpush3.bf16.msra.mxu0 %v764_v1 }
 0x2d4   : > { %1583 = vmatprep.subr.bf16.mxu0 %v1843_v14 }
 0x2d5   : > { %1552 = vmatpush3.bf16.msra.mxu1 %v763_v4  ;;  %v1204_v4 = vpop.permute.xlu0 %1203 }
 0x2d6   : > { %1560 = vmatmul.mubr.msk.bf16.vlgmr.msra.gmra.mxu0 %vm525_vm1, %v2067_v32  ;;  %1563 = vmatprep.subr.bf16.mxu1 %v1699_v3 }
 0x2d7   : > { %1585 = vmatprep.mubr.msk.bf16.mxu0 %vm1844_vm0, %v1843_v14 }
 0x2d8   : > { %1554 = vmatmul.mubr.msk.bf16.vlgmr.msra.gmra.mxu1 %vm525_vm1, %v2059_v29 }
 0x2d9   : > { %1564 = vmatpush3.bf16.msra.mxu1 %v1699_v3 }
 0x2da   : > { %1565 = vmatprep.subr.bf16.mxu1 %v1700_v5 }
 0x2dd   : > { %1566 = vmatpush3.bf16.msra.mxu1 %v1700_v5  ;;  %v1209_v5 = vpop.permute.xlu1 %1208 }
 0x2de   : > { %1567 = vmatprep.subr.bf16.mxu1 %v1701_v6 }
 0x2e1   : > { %1568 = vmatpush3.bf16.msra.mxu1 %v1701_v6 }
 0x2e2   : > { %1569 = vmatprep.subr.bf16.mxu1 %v1702_v7 }
 0x2e5   : > { %1570 = vmatpush3.bf16.msra.mxu1 %v1702_v7 }
 0x2e6   : > { %1571 = vmatprep.subr.bf16.mxu1 %v1703_v8 }
 0x2e9   : > { %1572 = vmatpush3.bf16.msra.mxu1 %v1703_v8 }
 0x2ea   : > { %1573 = vmatprep.subr.bf16.mxu1 %v1704_v9 }
 0x2ed   : > { %1574 = vmatpush3.bf16.msra.mxu1 %v1704_v9 }
 0x2ee   : > { %1575 = vmatprep.subr.bf16.mxu1 %v1705_v10 }
 0x2f1   : > { %1576 = vmatpush3.bf16.msra.mxu1 %v1705_v10 }
 0x2f2   : > { %1577 = vmatprep.subr.bf16.mxu1 %v1706_v11 }
 0x2f5   : > { %1578 = vmatpush3.bf16.msra.mxu1 %v1706_v11 }
 0x396   : > { %v840_v12 = vpop.f32.mrf.mxu0 }
 0x397   : > { %v849_v20 = vmul.f32 %v840_v12, %v2078_v47 }
 0x398   : > { %v799_v13 = vpop.f32.mrf.mxu1  ;;  %v1561_v15 = vpop.f32.mrf.mxu0 }
 0x399   : > { %v847_v18 = vmul.f32 %v799_v13, %v2072_v40  ;;  %v853_v28 = vadd.f32 %v849_v20, %v645_v59  ;;  %v1214_v13 = vpop.permute.xlu0 %1213  ;;  %v1219_v15 = vpop.permute.xlu1 %1218 }
 0x39a   : > { %v1555_v16 = vpop.f32.mrf.mxu1  ;;  %v843_v17 = vpop.f32.mrf.mxu0 }
 0x39b   : > { %v850_v19 = vmul.f32 %v843_v17, %v2089_v55  ;;  %v851_v26 = vadd.f32 %v847_v18, %v2081_v49 }
 0x39c   : > { %v802_v21 = vpop.f32.mrf.mxu1  ;;  %v1562_v22 = vpop.f32.mrf.mxu0 }
 0x39d   : > { %v848_v23 = vmul.f32 %v802_v21, %v2075_v44  ;;  %v854_v24 = vadd.f32 %v850_v19, %v646_v60 }
 0x39e   : > { %v1556_v25 = vpop.f32.mrf.mxu1 }
 0x39f   : > { %v852_v27 = vadd.f32 %v848_v23, %v2084_v50  ;;  %v873_v31 = vpack.c.bf16 %v854_v24, %v853_v28 }
 0x3a1   : > { %v872_v30 = vpack.c.bf16 %v852_v27, %v851_v26 }
 0x3a3   : > { %1579 = vmatprep.mubr.bf16.mxu1 %v872_v30 }
 0x3a4   : > { %1580 = vmatmul.mubr.bf16.vlgmr.msra.gmra.mxu1 %v873_v31 }
 0x464   : > { %v1581_v33 = vpop.f32.mrf.mxu1 }
 0x466   : > { %v956_v34 = vpop.f32.mrf.mxu1 }
 0x468   : > { %v1582_v35 = vpop.f32.mrf.mxu1 }
 0x469   : > { %v972_v39 = vpack.c.bf16 %v1582_v35, %v1581_v33 }
 0x46a   : > { %v959_v36 = vpop.f32.mrf.mxu1 }
 0x46b   : > { %v971_v37 = vpack.c.bf16 %v959_v36, %v956_v34 }
 0x46d   : > { %1584 = vmatpush3.bf16.msra.mxu0 %v971_v37 }
 0x46e   : > { %1589 = vmatprep.subr.bf16.mxu0 %v1843_v14 }
 0x470   : > { %1586 = vmatmul.mubr.msk.bf16.vlgmr.msra.gmra.mxu0 %vm525_vm1, %v2059_v29  ;;  %v1711_v29 = vld [vmem:[%s2202_s5 + $0x18] sm:$0xff]  }
 0x471   : > { %1590 = vmatpush3.bf16.msra.mxu0 %v972_v39  ;;  %1591 = vmatprep.mubr.msk.bf16.mxu0 %vm1844_vm0, %v1843_v14  ;;  %v1710_v14 = vld [vmem:[%s2202_s5 + $0x20] sm:$0xff]  }
 0x472   : > { %1595 = vmatprep.subr.bf16.mxu0 %v1707_v38 }
 0x478   : > { %1592 = vmatmul.mubr.msk.bf16.vlgmr.msra.gmra.mxu0 %vm525_vm1, %v2067_v32  ;;  %v1712_v32 = vld [vmem:[%s2202_s5 + $0x10] sm:$0xff]  }
 0x479   : > { %1596 = vmatpush3.bf16.msra.mxu0 %v1707_v38 }
 0x47a   : > { %1597 = vmatprep.subr.bf16.mxu0 %v1708_v41 }
 0x47d   : > { %1598 = vmatpush3.bf16.msra.mxu0 %v1708_v41 }
 0x47e   : > { %1599 = vmatprep.subr.bf16.mxu0 %v1709_v42 }
 0x481   : > { %1600 = vmatpush3.bf16.msra.mxu0 %v1709_v42 }
 0x482   : > { %1601 = vmatprep.subr.bf16.mxu0 %v1710_v14 }
 0x485   : > { %1602 = vmatpush3.bf16.msra.mxu0 %v1710_v14 }
 0x486   : > { %1603 = vmatprep.subr.bf16.mxu0 %v1711_v29 }
 0x489   : > { %1604 = vmatpush3.bf16.msra.mxu0 %v1711_v29 }
 0x48a   : > { %1605 = vmatprep.subr.bf16.mxu0 %v1712_v32 }
 0x48d   : > { %1606 = vmatpush3.bf16.msra.mxu0 %v1712_v32 }
 0x48e   : > { %1607 = vmatprep.subr.bf16.mxu0 %v1713_v43 }
 0x491   : > { %1608 = vmatpush3.bf16.msra.mxu0 %v1713_v43 }
 0x492   : > { %1609 = vmatprep.subr.bf16.mxu0 %v1714_v45 }
 0x495   : > { %1610 = vmatpush3.bf16.msra.mxu0 %v1714_v45 }
 0x530   : > { %v1007_v46 = vpop.f32.mrf.mxu0 }
 0x531   : > { %v1055_v49 = vmul.f32 %v1007_v46, %v2072_v40  ;;  %v1427_v40 = vld [vmem:[%s2203_s6] ss:$0 sm:$0xff] }
 0x532   : > { %v1587_v48 = vpop.f32.mrf.mxu0 }
 0x533   : > { %v1059_v53 = vadd.f32 %v1055_v49, %v851_v26 }
 0x534   : > { %v1010_v50 = vpop.f32.mrf.mxu0 }
 0x535   : > { %v1056_v51 = vmul.f32 %v1010_v50, %v2075_v44 }
 0x536   : > { %v1588_v52 = vpop.f32.mrf.mxu0 }
 0x537   : > { %v1060_v54 = vadd.f32 %v1056_v51, %v852_v27 }
 0x538   : > { %v1048_v56 = vpop.f32.mrf.mxu0 }
 0x539   : > { %v1063_v57 = vpack.c.bf16 %v1060_v54, %v1059_v53  ;;  %v1057_v59 = vmul.f32 %v1048_v56, %v2078_v47 }
 0x53a   : > { %v1593_v58 = vpop.f32.mrf.mxu0 }
 0x53b   : > { %1611 = vmatprep.mubr.bf16.mxu0 %v1063_v57  ;;  %v1061_v63 = vadd.f32 %v1057_v59, %v853_v28 }
 0x53c   : > { %v1051_v60 = vpop.f32.mrf.mxu0 }
 0x53d   : > { %v1058_v61 = vmul.f32 %v1051_v60, %v2089_v55 }
 0x53e   : > { %v1594_v62 = vpop.f32.mrf.mxu0 }
 0x53f   : > { %v1062_v0 = vadd.f32 %v1058_v61, %v854_v24 }
 0x541   : > { %v1064_v1 = vpack.c.bf16 %v1062_v0, %v1061_v63 }
 0x543   : > { %1612 = vmatmul.mubr.bf16.vlgmr.msra.gmra.mxu0 %v1064_v1 }
 0x603   : > { %v1613_v44 = vpop.f32.mrf.mxu0 }
 0x604   : > { %v1179_v2 = vadd.f32 %v1613_v44, %v1427_v40 }
 0x605   : > { %v1170_v3 = vpop.f32.mrf.mxu0 }
 0x606   : > { %v1191_v6 = vmul.f32 0.01, %v1179_v2  ;;  %v1171_v47 = vadd.f32 %v1427_v40, %v1170_v3  ;;  %vm1187_vm2 = vcmp.ge.f32.partialorder %v1179_v2, 0.0 }
 0x607   : > { %v1614_v7 = vpop.f32.mrf.mxu0 }
 0x608   : > { %v1189_v8 = vmul.f32 0.01, %v1171_v47  ;;  %v1182_v55 = vadd.f32 %v1614_v7, %v1427_v40  ;;  %vm1185_vm3 = vcmp.ge.f32.partialorder %v1171_v47, 0.0  ;;  %v1195_v10 = vsel %vm1187_vm2, %v1179_v2, %v1191_v6 }
 0x609   : > { %v1173_v9 = vpop.f32.mrf.mxu0  ;;  %v1223_v19 = vmul.f32 %v1214_v13, %v1195_v10 }
 0x60a   : > { %vm1188_vm4 = vcmp.ge.f32.partialorder %v1182_v55, 0.0  ;;  %v1192_v11 = vmul.f32 0.01, %v1182_v55  ;;  %v1174_v12 = vadd.f32 %v1427_v40, %v1173_v9  ;;  %v1193_v16 = vsel %vm1185_vm3, %v1171_v47, %v1189_v8 }
 0x60b   : > { %v1221_v22 = vmul.f32 %v1204_v4, %v1193_v16 }
 0x60c   : > { %v1196_v17 = vsel %vm1188_vm4, %v1182_v55, %v1192_v11  ;;  %vm1186_vm5 = vcmp.ge.f32.partialorder %v1174_v12, 0.0  ;;  %v1190_v18 = vmul.f32 0.01, %v1174_v12 }
 0x60d   : > { %v1224_v20 = vmul.f32 %v1219_v15, %v1196_v17 }
 0x60e   : > { %v1194_v21 = vsel %vm1186_vm5, %v1174_v12, %v1190_v18 }
 0x60f   : > { %v1232_v23 = vadd.f32 %v1224_v20, %v1223_v19  ;;  %v1222_v24 = vmul.f32 %v1209_v5, %v1194_v21 }
 0x611   : > { %v1233_v25 = vrot.slane %v1232_v23, 4  ;;  %v1225_v26 = vadd.f32 %v1222_v24, %v1221_v22 }
 0x613   : > { %v1234_v27 = vadd.f32 %v1233_v25, %v1232_v23  ;;  %v1226_v28 = vrot.slane %v1225_v26, 4 }
 0x615   : > { %v1235_v30 = vrot.slane %v1234_v27, 2  ;;  %v1227_v31 = vadd.f32 %v1226_v28, %v1225_v26 }
 0x617   : > { %v1236_v33 = vadd.f32 %v1235_v30, %v1234_v27  ;;  %v1228_v34 = vrot.slane %v1227_v31, 2 }
 0x619   : > { %v1237_v35 = vrot.slane %v1236_v33, 1  ;;  %v1229_v36 = vadd.f32 %v1228_v34, %v1227_v31 }
 0x61b   : > { %v1238_v37 = vadd.f32 %v1237_v35, %v1236_v33  ;;  %v1230_v38 = vrot.slane %v1229_v36, 1 }
 0x61d   : > { %v1231_v39 = vadd.f32 %v1230_v38, %v1229_v36  ;;  %1240 = vst [vmem:[%s366_s14 + $0x1] sm:$0x1] %v1238_v37 }
 0x61f   : > { %1239 = vst [vmem:[%s366_s14] sm:$0x1] %v1231_v39 }
 0x620   : > { %1782 = shalt.err (!%p1779_p5)
}
 0x621   : > { %s1783_s10 = scalar_lea.hbm %s2152_s23, 32  ;;  %s1787_s19 = scalar_lea.hbm %s2204_s7, 64 }
 0x622   : > { %p1784_p2 = scmp.ne.s32.totalorder %s2152_s23, %s1783_s10  ;;  %p1788_p6 = scmp.lt.s32.totalorder %s2152_s23, %s2204_s7 }
 0x623   : > { %p1789_p8 = scmp.lt.s32.totalorder %s1787_s19, %s1783_s10 }
 0x624   : > { %p1785_p1 = pnand %p1784_p2, %p2226_p7 }
 0x625   : > { %p1790_p3 = por %p1789_p8, %p1788_p6 }
 0x626   : > { %p1786_p4 = pneg %p1785_p1 }
 0x628   : > { %p1791_p11 = pnand %p1790_p3, %p1786_p4 }
 0x62a   : > { %1794 = shalt.err (!%p1791_p11)
}
 0x62b   : > { %s1847_s20 = smov 16   ;;  %s1848_s11 = smov 1  }
 0x62c   : > { %1621 = dma.vmem_to_hbm [thread:$0]  (%p2226_p7), %s2154_s15, 32, %s2152_s23, %s1242_s29, %s1847_s20, %s1847_s20, %s1848_s11  }
 0x62d PF: > { %s1270_s17 = sand.u32 1, %s1825_s24   ;;  %p2227_p9 = scmp.ne.s32.totalorder %s2213_s8, 0 }
 0x62e   : > { %p2228_p10 = scmp.ge.s32.totalorder %s1837_s27, 2  ;;  %s1271_s28 = scalar_lea.sflag [#allocation4], %s1270_s17 }
 0x630   : > { %p1632_p12 = pnand %p2228_p10, %p2227_p9 }
 0x632   : > { %p1633_p13 = pneg %p1632_p12 }
 0x634   : > { %1820 = dma.done.wait (%p1633_p13), %s1271_s28, 32  }
 0x635   : > { %1822 = vsyncadd (%p1633_p13), %s1271_s28, 4294967264  ;;  %p21_p0 = scmp.ge.s32.totalorder %s1943_s13, 4   ;;  %s2229_s24 = smov %s1829_s25 }
 0x636   : > { %s2230_s25 = smov %s1833_s26  ;;  %s2231_s26 = smov %s1963_s21 }
 0x637   : > { %s2232_s27 = smov %s1943_s13  ;;  %23 = sbr.rel (!%p21_p0) target bundleno = 8 (0x8), region = 108 }
 0x63c   :  { %1276 = vsyncpa [#allocation3], 1 }
 0x63d   :  { %1278 = vsyncpa [#allocation3 + $0x1], 1 }
 0x63e   :  { %1279 = vsyncpa [#allocation6], 1 }
 0x63f   :  { %1280 = vsyncpa [#allocation4], 1 }
 0x640   :  { %1282 = vsyncpa [#allocation4 + $0x1], 1 }

</bundles_post_ra>
